<compile_context>
chip_gen: v7x
topology: tpu7x:2x2x1
jax: 0.10.0
libtpu: 0.0.40
codegen_flags: <defaults>
</compile_context>

<pallas_src>
from functools import partial

import jax
import jax.numpy as jnp
from jax.experimental import pallas as pl
from jax.experimental.pallas import tpu as pltpu

NUM_ANCHORS = 32


# ---------------------------------------------------------------------------
# Pallas kernels
# ---------------------------------------------------------------------------
def _choir_field_kernel(inv_s_ref, cg_ref, cp_ref, bps_ref, anc_ref, oh_ref,
                        out_ref, *, remap, exp_w):
    """Fused CHOIR-field losses for one batch block (Bt rows).

    inv_s_ref : (Bt, 1)     1 / scalar per batch row
    cg_ref    : (Bt, P)     ground-truth CHOIR anchor-distance channel
    cp_ref    : (Bt, P)     predicted CHOIR anchor-distance channel (raw)
    bps_ref   : (3, P)      coordinate-major BPS point cloud (grid-resident)
    anc_ref   : (3, Bt, 32) coordinate-major predicted MANO anchors
    oh_ref    : (32, P)     one-hot anchor assignment (grid-resident)
    out_ref   : (Bt, 2)     per-row [SSE of 'distances' MSE, SSE of fit loss]
    """
    cg = cg_ref[...]                                             # (Bt, P)
    cp = cp_ref[...]                                             # (Bt, P)

    # ---- losses['distances'] = MSE(choir_gt[...,1], choir_pred[...,1]) ----
    e = cg - cp
    out_ref[:, 0:1] = jnp.sum(e * e, axis=-1, keepdims=True)     # (Bt, 1)

    # ---- CHOIRFittingLoss (anchor agreement) partial sums ------------------
    inv_s = inv_s_ref[...]                                       # (Bt, 1)
    bps = bps_ref[...]                                           # (3, P)
    oh = oh_ref[...]                                             # (32, P)
    # Per-point assigned anchor via one-hot matmul on the (idle) MXU:
    #   anc_c[b, p] = anchors[b, assign[p], c]
    anc_x = jnp.dot(anc_ref[0], oh, preferred_element_type=jnp.float32)
    anc_y = jnp.dot(anc_ref[1], oh, preferred_element_type=jnp.float32)
    anc_z = jnp.dot(anc_ref[2], oh, preferred_element_type=jnp.float32)
    # ||bps/scalar - anchor||: lane-dense FMAs, one sqrt over a (Bt, P) block.
    dx = bps[0:1, :] * inv_s - anc_x                             # (Bt, P)
    dy = bps[1:2, :] * inv_s - anc_y
    dz = bps[2:3, :] * inv_s - anc_z
    dist = jnp.sqrt(dx * dx + dy * dy + dz * dz)                 # (Bt, P)
    if remap:
        # choir_pred = -log(choir_pred)/exp_w ; then / scalar
        target = -jnp.log(cp) * (inv_s * (1.0 / exp_w))
    else:
        target = cp * inv_s
    ef = dist - target
    out_ref[:, 1:2] = jnp.sum(ef * ef, axis=-1, keepdims=True)   # (Bt, 1)


def _choir_mse_kernel(cg_ref, cp_ref, out_ref):
    """'distances' MSE partial sums only (predict_mano=False path)."""
    e = cg_ref[...] - cp_ref[...]
    out_ref[...] = jnp.sum(e * e, axis=-1, keepdims=True)        # (Bt, 1)


# ---------------------------------------------------------------------------
# Helpers (wrapper-side glue)
# ---------------------------------------------------------------------------
def _batch_tiling(B):
    """Rows per grid step (Bt) and padded batch size (Bp)."""
    if B <= 8:
        return B, B
    # >= 2 blocks so v7x's two TensorCores both get work ('parallel' axis);
    # <= 64 rows/block keeps double-buffered (Bt, P) input blocks well under
    # the 32 MiB scoped-VMEM default (v7x: 64 MiB physical) even for large P.
    bt = min(64, ((pl.cdiv(B, 2) + 7) // 8) * 8)
    bp = pl.cdiv(B, bt) * bt
    return bt, bp


def _select_view(labels, multi_view, temporal):
    """Mirrors the multi_view / temporal label slicing in CHOIRLoss.forward."""
    choir_gt = labels["choir"]
    scalar_gt = labels["scalar"]
    pose_gt, beta_gt = labels["theta"], labels["beta"]
    rot_gt, trans_gt = labels["rot"], labels["trans"]
    anchors_gt = labels["anchors"]
    if multi_view and not temporal:
        sel = lambda t: t[:, 0]
    elif temporal:
        sel = lambda t: t[:, -1]
    else:
        sel = None
    if sel is not None:
        choir_gt = sel(choir_gt)
        if scalar_gt.ndim == 2:
            scalar_gt = sel(scalar_gt)
        pose_gt, beta_gt = sel(pose_gt), sel(beta_gt)
        rot_gt, trans_gt = sel(rot_gt), sel(trans_gt)
        anchors_gt = sel(anchors_gt)
    return choir_gt, pose_gt, beta_gt, rot_gt, trans_gt, anchors_gt


# ---------------------------------------------------------------------------
# Forward wrapper (== CHOIRLoss.forward)
# ---------------------------------------------------------------------------
def choir_loss_forward(samples, labels, y_hat, epoch, *, bps, anchor_indices,
                       anchors_pred=None, predict_mano=True,
                       distance_w=1.0, mano_pose_w=1.0, mano_global_pose_w=1.0,
                       mano_shape_w=1.0, mano_agreement_w=1.0, mano_anchors_w=1.0,
                       kl_w=1e-4, multi_view=False, temporal=False,
                       remap_bps_distances=True, exponential_map_w=5.0,
                       use_kl_scheduler=False):
    scalar = jnp.asarray(samples["scalar"], jnp.float32)
    if scalar.ndim == 2:
        scalar = scalar.mean(axis=1)

    choir_gt, pose_gt, beta_gt, rot_gt, trans_gt, anchors_gt = _select_view(
        labels, multi_view, temporal)

    choir_pred = jnp.asarray(y_hat["choir"], jnp.float32)
    choir_gt = jnp.asarray(choir_gt, jnp.float32)
    B, P, _ = choir_pred.shape
    assert P % 32 == 0, "bps_dim must be a multiple of 32"

    # Channel-1 slices, lane-dense (B, P).
    # TODO(synk): if the upstream model emitted CHOIR channel-major (B, 2, P)
    # these stride-2 slice copies would disappear entirely.
    cg1 = choir_gt[:, :, 1]
    cp1 = choir_pred[:, :, 1]

    Bt, Bp = _batch_tiling(B)
    pad = Bp - B
    if pad:
        cg1 = jnp.pad(cg1, ((0, pad), (0, 0)), constant_values=1.0)
        cp1 = jnp.pad(cp1, ((0, pad), (0, 0)), constant_values=1.0)  # log-safe
    grid = (Bp // Bt,)
    cparams = pltpu.CompilerParams(dimension_semantics=("parallel",))

    if predict_mano:
        # TODO(synk): AffineMANO (MANO kinematics + anchor regression) has no
        # Pallas equivalent; predicted anchors are taken directly as input.
        anchors = jnp.asarray(anchors_pred, jnp.float32)              # (B, 32, 3)
        anchors_cm = jnp.transpose(anchors, (2, 0, 1))                # (3, B, 32)
        inv_s = (1.0 / scalar)[:, None]                               # (B, 1)
        if pad:
            anchors_cm = jnp.pad(anchors_cm, ((0, 0), (0, pad), (0, 0)))
            inv_s = jnp.pad(inv_s, ((0, pad), (0, 0)), constant_values=1.0)
        onehot = jax.nn.one_hot(jnp.asarray(anchor_indices, jnp.int32),
                                NUM_ANCHORS, dtype=jnp.float32).T     # (32, P)
        bps_t = jnp.asarray(bps, jnp.float32).T                       # (3, P)

        field = pl.pallas_call(
            partial(_choir_field_kernel, remap=remap_bps_distances,
                    exp_w=float(exponential_map_w)),
            out_shape=jax.ShapeDtypeStruct((Bp, 2), jnp.float32),
            grid=grid,
            in_specs=[
                pl.BlockSpec((Bt, 1), lambda i: (i, 0)),        # 1/scalar
                pl.BlockSpec((Bt, P), lambda i: (i, 0)),        # choir_gt[...,1]
                pl.BlockSpec((Bt, P), lambda i: (i, 0)),        # choir_pred[...,1]
                pl.BlockSpec((3, P), lambda i: (0, 0)),         # bps^T (resident)
                pl.BlockSpec((3, Bt, 32), lambda i: (0, i, 0)), # anchors (coord-major)
                pl.BlockSpec((32, P), lambda i: (0, 0)),        # one-hot (resident)
            ],
            out_specs=pl.BlockSpec((Bt, 2), lambda i: (i, 0)),
            compiler_params=cparams,
        )(inv_s, cg1, cp1, bps_t, anchors_cm, onehot)
        mse_sum = jnp.sum(field[:B, 0])     # padded rows discarded
        fit_sum = jnp.sum(field[:B, 1])
    else:
        part = pl.pallas_call(
            _choir_mse_kernel,
            out_shape=jax.ShapeDtypeStruct((Bp, 1), jnp.float32),
            grid=grid,
            in_specs=[pl.BlockSpec((Bt, P), lambda i: (i, 0)),
                      pl.BlockSpec((Bt, P), lambda i: (i, 0))],
            out_specs=pl.BlockSpec((Bt, 1), lambda i: (i, 0)),
            compiler_params=cparams,
        )(cg1, cp1)
        mse_sum = jnp.sum(part[:B, 0])

    losses = {"distances": distance_w * mse_sum / (B * P)}

    posterior, prior = y_hat.get("posterior"), y_hat.get("prior")
    if posterior is not None and prior is not None and posterior[0] is not None:
        kl_decay = 1.2 if use_kl_scheduler else 1.0
        kl_w_eff = min(1e-05, kl_w * kl_decay ** (epoch // 10))
        qm = jnp.asarray(posterior[0], jnp.float32)
        qv = jnp.asarray(posterior[1], jnp.float32)
        pm = jnp.asarray(prior[0], jnp.float32)
        pv = jnp.asarray(prior[1], jnp.float32)
        # Tiny (B, latent) op: plain jnp so XLA fuses it — a Pallas dispatch
        # costs more than the arithmetic (perf review).
        el = 0.5 * (jnp.log(pv) - jnp.log(qv) + qv / pv + (qm - pm) ** 2 / pv - 1.0)
        losses["kl_div"] = jnp.mean(jnp.sum(el, axis=-1)) * kl_w_eff

    # TODO(synk): predict_anchor_orientation / predict_anchor_position branch
    # raises NotImplementedError in the reference module and is not implemented.

    if predict_mano:
        mano = jnp.asarray(y_hat["mano"], jnp.float32)
        pose, shape = mano[:, :18], mano[:, 18:28]
        rot, trans = mano[:, 28:34], mano[:, 34:37]
        pose_gt = jnp.asarray(pose_gt, jnp.float32)
        beta_gt = jnp.asarray(beta_gt, jnp.float32)
        rot_gt = jnp.asarray(rot_gt, jnp.float32)
        trans_gt = jnp.asarray(trans_gt, jnp.float32)
        anchors_gt = jnp.asarray(anchors_gt, jnp.float32)
        # Parameter-space losses: a few KB with 3..32-wide last dims — plain
        # jnp (XLA-fused) beats a dedicated Pallas launch (perf review).
        shape_reg = jnp.mean(jnp.sqrt(jnp.sum(shape * shape, axis=-1)))
        losses["mano_pose"] = mano_pose_w * jnp.mean((pose - pose_gt) ** 2)
        losses["mano_shape"] = mano_shape_w * (
            shape_reg + jnp.mean((shape - beta_gt) ** 2))
        losses["mano_global_pose"] = mano_global_pose_w * (
            jnp.mean((rot - rot_gt) ** 2) + jnp.mean((trans - trans_gt) ** 2))
        losses["mano_anchors"] = mano_anchors_w * jnp.mean((anchors - anchors_gt) ** 2)
        losses["mano_anchor_agreement"] = mano_agreement_w * (fit_sum / (B * P))

    return losses


# ---------------------------------------------------------------------------
# Pure-JAX reference (mirrors the PyTorch forward, for correctness checking)
# ---------------------------------------------------------------------------
def reference_forward(samples, labels, y_hat, epoch, *, bps, anchor_indices,
                      anchors_pred=None, predict_mano=True,
                      distance_w=1.0, mano_pose_w=1.0, mano_global_pose_w=1.0,
                      mano_shape_w=1.0, mano_agreement_w=1.0, mano_anchors_w=1.0,
                      kl_w=1e-4, multi_view=False, temporal=False,
                      remap_bps_distances=True, exponential_map_w=5.0,
                      use_kl_scheduler=False):
    scalar = jnp.asarray(samples["scalar"], jnp.float32)
    if scalar.ndim == 2:
        scalar = scalar.mean(axis=1)
    choir_gt, pose_gt, beta_gt, rot_gt, trans_gt, anchors_gt = _select_view(
        labels, multi_view, temporal)
    choir_pred = jnp.asarray(y_hat["choir"], jnp.float32)
    choir_gt = jnp.asarray(choir_gt, jnp.float32)

    losses = {"distances": distance_w * jnp.mean(
        (choir_gt[..., 1] - choir_pred[..., 1]) ** 2)}

    posterior, prior = y_hat.get("posterior"), y_hat.get("prior")
    if posterior is not None and prior is not None and posterior[0] is not None:
        kl_decay = 1.2 if use_kl_scheduler else 1.0
        kl_w_eff = min(1e-05, kl_w * kl_decay ** (epoch // 10))
        qm, qv = posterior
        pm, pv = prior
        el = 0.5 * (jnp.log(pv) - jnp.log(qv) + qv / pv + (qm - pm) ** 2 / pv - 1.0)
        losses["kl_div"] = jnp.mean(jnp.sum(el, axis=-1)) * kl_w_eff

    if predict_mano:
        mano = jnp.asarray(y_hat["mano"], jnp.float32)
        pose, shape = mano[:, :18], mano[:, 18:28]
        rot, trans = mano[:, 28:34], mano[:, 34:37]
        shape_reg = jnp.mean(jnp.linalg.norm(shape, axis=-1))
        anchors = jnp.asarray(anchors_pred, jnp.float32)

        cp = choir_pred
        if remap_bps_distances:
            cp = -jnp.log(cp) / exponential_map_w
        cp = cp / scalar[:, None, None]
        B, P, _ = cp.shape
        bps_b = jnp.broadcast_to(jnp.asarray(bps, jnp.float32)[None], (B, P, 3))
        bps_b = bps_b / scalar[:, None, None]
        ad = jnp.sqrt(jnp.sum((bps_b[:, :, None, :] - anchors[:, None, :, :]) ** 2,
                              axis=-1))                                  # (B,P,32)
        idx = jnp.broadcast_to(jnp.asarray(anchor_indices, jnp.int32)[None, :, None],
                               (B, P, 1))
        dsel = jnp.take_along_axis(ad, idx, axis=2)[..., 0]              # (B,P)
        fit = jnp.mean((dsel - cp[:, :, -1]) ** 2)

        losses["mano_pose"] = mano_pose_w * jnp.mean((pose - pose_gt) ** 2)
        losses["mano_shape"] = mano_shape_w * (shape_reg + jnp.mean((shape - beta_gt) ** 2))
        losses["mano_global_pose"] = mano_global_pose_w * (
            jnp.mean((rot - rot_gt) ** 2) + jnp.mean((trans - trans_gt) ** 2))
        losses["mano_anchors"] = mano_anchors_w * jnp.mean((anchors - anchors_gt) ** 2)
        losses["mano_anchor_agreement"] = mano_agreement_w * fit
    return losses


# ---------------------------------------------------------------------------
if __name__ == "__main__":
    key = jax.random.PRNGKey(0)
    B, P, A, LAT = 2, 256, NUM_ANCHORS, 32
    ks = jax.random.split(key, 14)

    bps = 0.2 * jax.random.normal(ks[0], (P, 3), jnp.float32)
    anchor_indices = jnp.arange(P, dtype=jnp.int32) % A

    scalar = jax.random.uniform(ks[1], (B,), jnp.float32, 0.8, 1.2)
    choir_gt = jax.random.uniform(ks[2], (B, P, 2), jnp.float32, 0.05, 0.95)
    choir_pred = jax.random.uniform(ks[3], (B, P, 2), jnp.float32, 0.05, 0.95)

    pose_gt = 0.1 * jax.random.normal(ks[4], (B, 18), jnp.float32)
    beta_gt = 0.1 * jax.random.normal(ks[5], (B, 10), jnp.float32)
    rot_gt = 0.1 * jax.random.normal(ks[6], (B, 6), jnp.float32)
    trans_gt = 0.1 * jax.random.normal(ks[7], (B, 3), jnp.float32)
    anchors_gt = 0.1 * jax.random.normal(ks[8], (B, A, 3), jnp.float32)
    joints_gt = 0.1 * jax.random.normal(ks[9], (B, 21, 3), jnp.float32)

    mano_pred = 0.1 * jax.random.normal(ks[10], (B, 18 + 10 + 6 + 3), jnp.float32)
    anchors_pred = 0.1 * jax.random.normal(ks[11], (B, A, 3), jnp.float32)
    post_m = jax.random.normal(ks[12], (B, LAT), jnp.float32)
    post_v = jax.random.uniform(ks[13], (B, LAT), jnp.float32, 0.5, 1.5)
    prior_m = jnp.zeros((B, LAT), jnp.float32)
    prior_v = jnp.ones((B, LAT), jnp.float32)

    samples = {"scalar": scalar}
    labels = {"choir": choir_gt, "scalar": scalar, "joints": joints_gt,
              "anchors": anchors_gt, "theta": pose_gt, "beta": beta_gt,
              "rot": rot_gt, "trans": trans_gt}
    y_hat = {"choir": choir_pred, "orientations": None,
             "posterior": (post_m, post_v), "prior": (prior_m, prior_v),
             "mano": mano_pred}

    cfg = dict(distance_w=1.0, mano_pose_w=1.0, mano_global_pose_w=1.0,
               mano_shape_w=1.0, mano_agreement_w=1.0, mano_anchors_w=1.0,
               kl_w=1e-4, multi_view=False, temporal=False,
               remap_bps_distances=True, exponential_map_w=5.0,
               use_kl_scheduler=False, predict_mano=True)

    losses = choir_loss_forward(samples, labels, y_hat, epoch=12,
                                bps=bps, anchor_indices=anchor_indices,
                                anchors_pred=anchors_pred, **cfg)
    jax.block_until_ready(losses)

    ref = reference_forward(samples, labels, y_hat, epoch=12,
                            bps=bps, anchor_indices=anchor_indices,
                            anchors_pred=anchors_pred, **cfg)
    jax.block_until_ready(ref)

    assert set(losses.keys()) == set(ref.keys()), (sorted(losses), sorted(ref))
    for name in sorted(ref):
        assert bool(jnp.isfinite(losses[name])), name
        assert jnp.allclose(losses[name], ref[name], rtol=1e-3, atol=1e-6), (
            name, losses[name], ref[name])

    print("KERNEL_OK")
</pallas_src>

<mosaic_0001>
module attributes {stable_mosaic.version = 11 : i64} {
  func.func @_choir_field_kernel(%arg0: i32, %arg1: memref<2x1xf32, #tpu.memory_space<vmem>>, %arg2: memref<2x256xf32, #tpu.memory_space<vmem>>, %arg3: memref<2x256xf32, #tpu.memory_space<vmem>>, %arg4: memref<3x256xf32, #tpu.memory_space<vmem>>, %arg5: memref<3x2x32xf32, #tpu.memory_space<vmem>>, %arg6: memref<32x256xf32, #tpu.memory_space<vmem>>, %arg7: memref<2x2xf32, #tpu.memory_space<vmem>>) attributes {dimension_semantics = [#tpu.dimension_semantics<parallel>], iteration_bounds = array<i64: 1>, scalar_prefetch = 0 : i64, scratch_operands = 0 : i64, tpu.core_type = #tpu.core_type<tc>, window_params = [{transform_indices = @transform_0, window_bounds = array<i64: 2, 1>}, {transform_indices = @transform_1, window_bounds = array<i64: 2, 256>}, {transform_indices = @transform_2, window_bounds = array<i64: 2, 256>}, {pipeline_mode = #tpu.pipeline_mode<synchronous>, transform_indices = @transform_3, window_bounds = array<i64: 3, 256>}, {transform_indices = @transform_4, window_bounds = array<i64: 3, 2, 32>}, {pipeline_mode = #tpu.pipeline_mode<synchronous>, transform_indices = @transform_5, window_bounds = array<i64: 32, 256>}, {transform_indices = @transform_6, window_bounds = array<i64: 2, 2>}]} {
    %c0 = arith.constant 0 : index
    %c0_0 = arith.constant 0 : index
    %0 = vector.load %arg2[%c0, %c0_0] : memref<2x256xf32, #tpu.memory_space<vmem>>, vector<2x256xf32>
    %c0_1 = arith.constant 0 : index
    %c0_2 = arith.constant 0 : index
    %1 = vector.load %arg3[%c0_1, %c0_2] : memref<2x256xf32, #tpu.memory_space<vmem>>, vector<2x256xf32>
    %2 = arith.subf %0, %1 : vector<2x256xf32>
    %3 = arith.mulf %2, %2 : vector<2x256xf32>
    %cst = arith.constant dense<0.000000e+00> : vector<2xf32>
    %4 = vector.multi_reduction <add>, %3, %cst [1] : vector<2x256xf32> to vector<2xf32>
    %5 = vector.shape_cast %4 : vector<2xf32> to vector<2x1xf32>
    %c0_3 = arith.constant 0 : index
    %c0_4 = arith.constant 0 : index
    %6 = vector.load %arg7[%c0_3, %c0_4] : memref<2x2xf32, #tpu.memory_space<vmem>>, vector<2x1xf32>
    tpu.vector_store %arg7[%c0_3, %c0_4], %5 {strides = array<i32>} : memref<2x2xf32, #tpu.memory_space<vmem>>, vector<2x1xf32>,
    %c0_5 = arith.constant 0 : index
    %c0_6 = arith.constant 0 : index
    %7 = vector.load %arg1[%c0_5, %c0_6] : memref<2x1xf32, #tpu.memory_space<vmem>>, vector<2x1xf32>
    %c0_7 = arith.constant 0 : index
    %c0_8 = arith.constant 0 : index
    %8 = vector.load %arg4[%c0_7, %c0_8] : memref<3x256xf32, #tpu.memory_space<vmem>>, vector<3x256xf32>
    %c0_9 = arith.constant 0 : index
    %c0_10 = arith.constant 0 : index
    %9 = vector.load %arg6[%c0_9, %c0_10] : memref<32x256xf32, #tpu.memory_space<vmem>>, vector<32x256xf32>
    %c0_11 = arith.constant 0 : index
    %c0_12 = arith.constant 0 : index
    %c0_13 = arith.constant 0 : index
    %10 = vector.load %arg5[%c0_11, %c0_12, %c0_13] : memref<3x2x32xf32, #tpu.memory_space<vmem>>, vector<1x2x32xf32>
    %11 = vector.shape_cast %10 : vector<1x2x32xf32> to vector<2x32xf32>
    %cst_14 = arith.constant dense<0.000000e+00> : vector<2x256xf32>
    %12 = tpu.matmul %11, %9, %cst_14 {dimension_numbers = #tpu.dot_dimension_numbers<[1], [0], [0], [1], [0, 0, 1, 1], [], []>} : vector<2x32xf32>, vector<32x256xf32>, vector<2x256xf32> -> vector<2x256xf32>
    %c1 = arith.constant 1 : index
    %c0_15 = arith.constant 0 : index
    %c0_16 = arith.constant 0 : index
    %13 = vector.load %arg5[%c1, %c0_15, %c0_16] : memref<3x2x32xf32, #tpu.memory_space<vmem>>, vector<1x2x32xf32>
    %14 = vector.shape_cast %13 : vector<1x2x32xf32> to vector<2x32xf32>
    %cst_17 = arith.constant dense<0.000000e+00> : vector<2x256xf32>
    %15 = tpu.matmul %14, %9, %cst_17 {dimension_numbers = #tpu.dot_dimension_numbers<[1], [0], [0], [1], [0, 0, 1, 1], [], []>} : vector<2x32xf32>, vector<32x256xf32>, vector<2x256xf32> -> vector<2x256xf32>
    %c2 = arith.constant 2 : index
    %c0_18 = arith.constant 0 : index
    %c0_19 = arith.constant 0 : index
    %16 = vector.load %arg5[%c2, %c0_18, %c0_19] : memref<3x2x32xf32, #tpu.memory_space<vmem>>, vector<1x2x32xf32>
    %17 = vector.shape_cast %16 : vector<1x2x32xf32> to vector<2x32xf32>
    %cst_20 = arith.constant dense<0.000000e+00> : vector<2x256xf32>
    %18 = tpu.matmul %17, %9, %cst_20 {dimension_numbers = #tpu.dot_dimension_numbers<[1], [0], [0], [1], [0, 0, 1, 1], [], []>} : vector<2x32xf32>, vector<32x256xf32>, vector<2x256xf32> -> vector<2x256xf32>
    %19 = vector.extract_strided_slice %8 {offsets = [0, 0], sizes = [1, 256], strides = [1, 1]} : vector<3x256xf32> to vector<1x256xf32>
    %20 = vector.broadcast %19 : vector<1x256xf32> to vector<2x256xf32>
    %21 = vector.broadcast %7 : vector<2x1xf32> to vector<2x256xf32>
    %22 = arith.mulf %20, %21 : vector<2x256xf32>
    %23 = arith.subf %22, %12 : vector<2x256xf32>
    %24 = vector.extract_strided_slice %8 {offsets = [1, 0], sizes = [1, 256], strides = [1, 1]} : vector<3x256xf32> to vector<1x256xf32>
    %25 = vector.broadcast %24 : vector<1x256xf32> to vector<2x256xf32>
    %26 = vector.broadcast %7 : vector<2x1xf32> to vector<2x256xf32>
    %27 = arith.mulf %25, %26 : vector<2x256xf32>
    %28 = arith.subf %27, %15 : vector<2x256xf32>
    %29 = vector.extract_strided_slice %8 {offsets = [2, 0], sizes = [1, 256], strides = [1, 1]} : vector<3x256xf32> to vector<1x256xf32>
    %30 = vector.broadcast %29 : vector<1x256xf32> to vector<2x256xf32>
    %31 = vector.broadcast %7 : vector<2x1xf32> to vector<2x256xf32>
    %32 = arith.mulf %30, %31 : vector<2x256xf32>
    %33 = arith.subf %32, %18 : vector<2x256xf32>
    %34 = arith.mulf %23, %23 : vector<2x256xf32>
    %35 = arith.mulf %28, %28 : vector<2x256xf32>
    %36 = arith.addf %34, %35 : vector<2x256xf32>
    %37 = arith.mulf %33, %33 : vector<2x256xf32>
    %38 = arith.addf %36, %37 : vector<2x256xf32>
    %39 = math.sqrt %38 : vector<2x256xf32>
    %40 = math.log %1 : vector<2x256xf32>
    %cst_21 = arith.constant 0.000000e+00 : f32
    %41 = vector.broadcast %cst_21 : f32 to vector<2x256xf32>
    %42 = arith.subf %41, %40 : vector<2x256xf32>
    %cst_22 = arith.constant 2.000000e-01 : f32
    %43 = vector.broadcast %cst_22 : f32 to vector<2x1xf32>
    %44 = arith.mulf %7, %43 : vector<2x1xf32>
    %45 = vector.broadcast %44 : vector<2x1xf32> to vector<2x256xf32>
    %46 = arith.mulf %42, %45 : vector<2x256xf32>
    %47 = arith.subf %39, %46 : vector<2x256xf32>
    %48 = arith.mulf %47, %47 : vector<2x256xf32>
    %cst_23 = arith.constant dense<0.000000e+00> : vector<2xf32>
    %49 = vector.multi_reduction <add>, %48, %cst_23 [1] : vector<2x256xf32> to vector<2xf32>
    %50 = vector.shape_cast %49 : vector<2xf32> to vector<2x1xf32>
    %c0_24 = arith.constant 0 : index
    %c1_25 = arith.constant 1 : index
    %51 = vector.load %arg7[%c0_24, %c1_25] : memref<2x2xf32, #tpu.memory_space<vmem>>, vector<2x1xf32>
    tpu.vector_store %arg7[%c0_24, %c1_25], %50 {strides = array<i32>} : memref<2x2xf32, #tpu.memory_space<vmem>>, vector<2x1xf32>,
    return
  }
  func.func @transform_0(%arg0: i32) -> (i32, i32) {
    %c0_i32 = arith.constant 0 : i32
    %c0_i32_0 = arith.constant 0 : i32
    return %arg0, %c0_i32 : i32, i32
  }
  func.func @transform_1(%arg0: i32) -> (i32, i32) {
    %c0_i32 = arith.constant 0 : i32
    %c0_i32_0 = arith.constant 0 : i32
    return %arg0, %c0_i32 : i32, i32
  }
  func.func @transform_2(%arg0: i32) -> (i32, i32) {
    %c0_i32 = arith.constant 0 : i32
    %c0_i32_0 = arith.constant 0 : i32
    return %arg0, %c0_i32 : i32, i32
  }
  func.func @transform_3(%arg0: i32) -> (i32, i32) {
    %c0_i32 = arith.constant 0 : i32
    %c0_i32_0 = arith.constant 0 : i32
    %c0_i32_1 = arith.constant 0 : i32
    return %c0_i32, %c0_i32_0 : i32, i32
  }
  func.func @transform_4(%arg0: i32) -> (i32, i32, i32) {
    %c0_i32 = arith.constant 0 : i32
    %c0_i32_0 = arith.constant 0 : i32
    %c0_i32_1 = arith.constant 0 : i32
    return %c0_i32, %arg0, %c0_i32_0 : i32, i32, i32
  }
  func.func @transform_5(%arg0: i32) -> (i32, i32) {
    %c0_i32 = arith.constant 0 : i32
    %c0_i32_0 = arith.constant 0 : i32
    %c0_i32_1 = arith.constant 0 : i32
    return %c0_i32, %c0_i32_0 : i32, i32
  }
  func.func @transform_6(%arg0: i32) -> (i32, i32) {
    %c0_i32 = arith.constant 0 : i32
    %c0_i32_0 = arith.constant 0 : i32
    return %arg0, %c0_i32 : i32, i32
  }
}

</mosaic_0001>

<bundles_post_ra>
// kernel: tpu_custom_call.1
= control target key start
LH: loop header
LB: loop body
LE: loop exit
PB: predicated region body
PF: predicated region fallthrough
CT: control target
= control target key end

     0   :  { %11 = vsyncpa [#allocation3], 0  ;;  %s730_s0 = inlined_call_operand.vmem [shape: f32[2,1], index: 0, kind: input, shape index: {}]   ;;  %s731_s1 = inlined_call_operand.hbm [shape: f32[2,256], index: 1, kind: input, shape index: {}]   ;;  %s732_s2 = inlined_call_operand.hbm [shape: f32[2,256], index: 2, kind: input, shape index: {}]   ;;  %s733_s3 = inlined_call_operand.vmem [shape: f32[3,256], index: 3, kind: input, shape index: {}]   ;;  %s734_s4 = inlined_call_operand.vmem [shape: f32[3,2,32], index: 4, kind: input, shape index: {}]   ;;  %s735_s5 = inlined_call_operand.hbm [shape: f32[32,256], index: 5, kind: input, shape index: {}]   ;;  %s736_s6 = inlined_call_operand.hbm [shape: f32[2,2], index: 6, kind: output, shape index: {}]  }
   0x1   :  { %12 = vsyncpa [#allocation6], 0 }
   0x2   :  { %13 = vsyncpa [#allocation4], 0  ;;  %s613_s21 = smov [#allocation5]   ;;  %s614_s23 = smov [#allocation2]  }
   0x3   :  { %s32_s22 = sshll.u32 %s613_s21, 4  ;;  %s22_s24 = sshll.u32 %s614_s23, 4  ;;  %s33_s22 = int_to_ptr.vmem [resolvable:$true] %s32_s22  ;;  %s23_s24 = int_to_ptr.vmem [resolvable:$true] %s22_s24 }
   0x4   :  { %s519_s27 = scalar_lea.hbm %s732_s2, 64 }
   0x5   :  { %p520_p0 = scmp.ne.s32.totalorder %s732_s2, %s519_s27  ;;  %p523_p1 = scmp.lt.u32.totalorder %s519_s27, %s732_s2 }
   0x7   :  { %p525_p2 = pnand %p523_p1, %p520_p0 }
   0x9   :  { %528 = shalt.err (!%p525_p2)
}
   0xa   :  { %s529_s8 = scalar_lea.vmem %s33_s22, 64  ;;  %p534_p4 = scmp.lt.s32.totalorder %s33_s22, %s33_s22 }
   0xb   :  { %p530_p3 = scmp.ne.s32.totalorder %s33_s22, %s529_s8  ;;  %p535_p5 = scmp.lt.s32.totalorder %s529_s8, %s529_s8 }
   0xd   :  { %p536_p6 = por %p535_p5, %p534_p4 }
   0xf   :  { %p537_p7 = pnand %p536_p6, %p530_p3 }
  0x11   :  { %540 = shalt.err (!%p537_p7)
}
  0x12   :  { %35 = dma.hbm_to_vmem [thread:$0]  %s732_s2, 64, %s33_s22, [#allocation6]  }
  0x13   :  { %s541_s13 = scalar_lea.hbm %s731_s1, 64 }
  0x14   :  { %p542_p8 = scmp.ne.s32.totalorder %s731_s1, %s541_s13  ;;  %p545_p9 = scmp.lt.u32.totalorder %s541_s13, %s731_s1 }
  0x16   :  { %p547_p10 = pnand %p545_p9, %p542_p8 }
  0x18   :  { %550 = shalt.err (!%p547_p10)
}
  0x19   :  { %s551_s18 = scalar_lea.vmem %s23_s24, 64  ;;  %p556_p12 = scmp.lt.s32.totalorder %s23_s24, %s23_s24 }
  0x1a   :  { %p552_p11 = scmp.ne.s32.totalorder %s23_s24, %s551_s18  ;;  %p557_p13 = scmp.lt.s32.totalorder %s551_s18, %s551_s18 }
  0x1c   :  { %p558_p0 = por %p557_p13, %p556_p12 }
  0x1e   :  { %p559_p1 = pnand %p558_p0, %p552_p11 }
  0x20   :  { %562 = shalt.err (!%p559_p1)
}
  0x21   :  { %25 = dma.hbm_to_vmem [thread:$0]  %s731_s1, 64, %s23_s24, [#allocation3]  }
  0x22   :  { %s615_s20 = smov [#allocation7]   ;;  %s563_s25 = scalar_lea.hbm %s735_s5, 1024 }
  0x23   :  { %s45_s21 = sshll.u32 %s615_s20, 4  ;;  %p564_p2 = scmp.ne.s32.totalorder %s735_s5, %s563_s25  ;;  %s46_s21 = int_to_ptr.vmem [resolvable:$true] %s45_s21 }
  0x24   :  { %p567_p3 = scmp.lt.u32.totalorder %s563_s25, %s735_s5 }
  0x26   :  { %p569_p4 = pnand %p567_p3, %p564_p2 }
  0x28   :  { %572 = shalt.err (!%p569_p4)
}
  0x29   :  { %s573_s30 = scalar_lea.vmem %s46_s21, 1024  ;;  %p578_p6 = scmp.lt.s32.totalorder %s46_s21, %s46_s21 }
  0x2a   :  { %p574_p5 = scmp.ne.s32.totalorder %s46_s21, %s573_s30  ;;  %p579_p7 = scmp.lt.s32.totalorder %s573_s30, %s573_s30 }
  0x2c   :  { %p580_p8 = por %p579_p7, %p578_p6 }
  0x2e   :  { %p581_p9 = pnand %p580_p8, %p574_p5 }
  0x30   :  { %584 = shalt.err (!%p581_p9)
}
  0x31   :  { %s616_s1 = smov 256   ;;  %s617_s24 = smov 16  }
  0x32   :  { %51 = dma.hbm_to_vmem [thread:$0]  %s735_s5, 1024, %s46_s21, [#allocation6], %s616_s1, %s616_s1, %s617_s24  }
  0x33   :  { %607 = dma.done.wait [#allocation3], 64  }
  0x34   :  { %608 = vsyncadd [#allocation3], 4294967232 }
  0x35   :  { %609 = dma.done.wait [#allocation6], 1088  }
  0x36   :  { %610 = vsyncadd [#allocation6], 4294966208  ;;  %v618_v0 = vmov 0.0   ;;  %v619_v1 = vmov 0   ;;  %v87_v2 = vld [vmem:[#allocation7 + $0x8] sm:$0xff]  ;;  %v89_v3 = vld [vmem:[#allocation7 + $0x18] sm:$0xff]  ;;  %v69_v21 = vlaneseq }
  0x37   :  { %163 = vmatprep.mubr.f32.mxu0 %v618_v0  ;;  %239 = vmatprep.mubr.f32.mxu1 %v618_v0  ;;  %v86_v4 = vld [vmem:[#allocation7] sm:$0xff]  ;;  %v478_v5 = vpack.c.bf16 %v89_v3, %v87_v2  ;;  %v88_v6 = vld [vmem:[#allocation7 + $0x10] sm:$0xff]  ;;  %v91_v7 = vld [vmem:[#allocation7 + $0x28] sm:$0xff]  ;;  %vm95_vm0 = vcmask 261120   ;;  %v620_v19 = vmov 1983009808  }
  0x38   :  { %512 = vset.pattern.permute.xlu0 %v619_v1  ;;  %v93_v8 = vld [vmem:[#allocation7 + $0x38] sm:$0xff]  ;;  %v480_v9 = vpack.c.bf16 %v88_v6, %v86_v4  ;;  %v90_v11 = vld [vmem:[#allocation7 + $0x20] sm:$0xff]  ;;  %v92_v12 = vld [vmem:[#allocation7 + $0x30] sm:$0xff]  ;;  %v67_v20 = vunpack.c.l.s4 %v620_v19  ;;  %v70_v25 = vshrl.u32 %v69_v21, 7  ;;  %vm76_vm1 = vcmask 1041408  }
  0x39   :  { %v482_v10 = vpack.c.bf16 %v93_v8, %v91_v7  ;;  %479 = vmatprep.subr.bf16.mxu0 %v478_v5  ;;  %487 = vmatprep.subr.bf16.mxu1 %v478_v5  ;;  %v84_v13 = vld [vmem:[%s730_s0] sm:$0x3]  ;;  %v484_v14 = vpack.c.bf16 %v92_v12, %v90_v11  ;;  %v474_v17 = vld [vmem:[%s734_s4 + $0x2] sm:$0x3]  ;;  %v476_v18 = vld [vmem:[%s734_s4 + $0x4] sm:$0x3] }
  0x3a   :  { %481 = vmatpush1.bf16.msra.mxu0 %v480_v9  ;;  %489 = vmatpush1.bf16.msra.mxu1 %v480_v9  ;;  %v421_v15 = vmul.f32 0.2, %v84_v13  ;;  %v94_v16 = vld [vmem:[%s734_s4] sm:$0x3]  ;;  %v68_v22 = vunpack.c.0.s8 %v67_v20  ;;  %v62_v23 = vld [vmem:[#allocation5] sm:$0xf] }
  0x3b   :  { %483 = vmatprep.subr.bf16.mxu0 %v482_v10  ;;  %491 = vmatprep.subr.bf16.mxu1 %v482_v10  ;;  %v61_v24 = vld [vmem:[#allocation2] sm:$0xf]  ;;  %513 = vlog2.f32 %v62_v23  ;;  %v621_v34 = vmov 269488144   ;;  %v325_v46 = vsub.s32 0, %v70_v25  ;;  %v352_v47 = vsub.s32 1, %v70_v25 }
  0x3c   :  { %343 = vperm.xlu0 %512, %v84_v13   ;;  %v63_v26 = vsub.f32 %v61_v24, %v62_v23  ;;  %v71_v27 = vsub.s32 %v68_v22, %v70_v25  ;;  %v427_v35 = vunpack.c.l.s4 %v621_v34  ;;  %v85_v48 = vld [vmem:[%s733_s3] sm:$0x77]  ;;  %v329_v49 = vsub.s32 4, %v70_v25  ;;  %s622_s3 = smov [#allocation8]  }
  0x3d   :  { %v356_v50 = vsub.s32 5, %v70_v25  ;;  %v326_v51 = vrot.slane %v85_v48, %v325_v46  ;;  %v353_v52 = vrot.slane %v85_v48, %v352_v47  ;;  %v374_v57 = vsub.s32 2, %v70_v25  ;;  %s463_s16 = sshll.u32 %s622_s3, 4  ;;  %s464_s16 = int_to_ptr.vmem [resolvable:$true] %s463_s16 }
  0x3e   :  { %485 = vmatpush1.bf16.msra.mxu0 %v484_v14  ;;  %493 = vmatpush1.bf16.msra.mxu1 %v484_v14  ;;  %v64_v28 = vmul.f32 %v63_v26, %v63_v26  ;;  %v428_v37 = vunpack.c.0.s8 %v427_v35  ;;  %v330_v53 = vrot.slane %v85_v48, %v329_v49  ;;  %v378_v60 = vsub.s32 6, %v70_v25  ;;  %s585_s17 = scalar_lea.vmem %s464_s16, 32  ;;  %p590_p11 = scmp.lt.s32.totalorder %s464_s16, %s464_s16 }
  0x3f   :  { %495 = vmatprep.subr.bf16.mxu0 %v478_v5  ;;  %v357_v54 = vrot.slane %v85_v48, %v356_v50  ;;  %v336_v55 = vrot.slane %v326_v51, %v325_v46  ;;  %v363_v56 = vrot.slane %v353_v52, %v352_v47  ;;  %v375_v63 = vrot.slane %v85_v48, %v374_v57  ;;  %p586_p10 = scmp.ne.s32.totalorder %s464_s16, %s585_s17  ;;  %p591_p12 = scmp.lt.s32.totalorder %s585_s17, %s585_s17 }
  0x40   :  { %424 = vperm.xlu0 %512, %v421_v15   ;;  %v72_v29 = vrot.slane %v64_v28, %v71_v27  ;;  %v431_v40 = vsub.s32 %v428_v37, %v70_v25  ;;  %v340_v58 = vrot.slane %v330_v53, %v325_v46  ;;  %v379_v4 = vrot.slane %v85_v48, %v378_v60 }
  0x41   :  { %473 = vmatmul.mubr.msk.f32.vlgmr.msra.gmra.mrb[0].mxu0 %vm95_vm0, %v94_v16  ;;  %475 = vmatmul.mubr.msk.f32.vlgmr.msra.gmra.mrb[0].mxu1 %vm95_vm0, %v474_v17  ;;  %v367_v59 = vrot.slane %v357_v54, %v352_v47  ;;  %vm82_vm6 = vcmask 1024   ;;  %vm455_vm7 = vcmask 9224   ;;  %p592_p13 = por %p591_p12, %p590_p11 }
  0x42   :  { %497 = vmatpush1.bf16.msra.mxu0 %v480_v9  ;;  %315 = vmatprep.mubr.f32.mxu0 %v618_v0  ;;  %v73_v30 = vcombine.high %v72_v29, %v72_v29  ;;  %v77_v31 = vsel %vm76_vm1, %v72_v29, 0.0  ;;  %v385_v9 = vrot.slane %v375_v63, %v374_v57  ;;  %v389_v16 = vrot.slane %v379_v4, %v374_v57 }
  0x43   :  { %499 = vmatprep.subr.bf16.mxu0 %v482_v10  ;;  %p593_p0 = pnand %p592_p13, %p586_p10 }
  0x44   :  { %v78_v32 = vsel %vm76_vm1, %v73_v30, 0.0 }
  0x45   :  { %v79_v33 = vadd.f32 %v78_v32, %v77_v31  ;;  %v514_v36 = vpop.eup %513 }
  0x46   :  { %501 = vmatpush1.bf16.msra.mxu0 %v484_v14  ;;  %v419_v38 = vmul.f32 0.6931472, %v514_v36 }
  0x47   :  { %80 = vadd.xlane.f32.xlu1 %v79_v33 }
  0x48   :  { %v420_v41 = vsub.f32 0.0, %v419_v38 }
  0x49   :  { %477 = vmatmul.mubr.msk.f32.vlgmr.msra.gmra.mrb[2].mxu0 %vm95_vm0, %v476_v18 }
  0xbb   :  { %v344_v39 = vpop.permute.xlu0 %343 }
  0xbc   :  { %v346_v61 = vmul.f32 %v344_v39, %v336_v55  ;;  %v368_v62 = vmul.f32 %v363_v56, %v344_v39  ;;  %v347_v0 = vmul.f32 %v344_v39, %v340_v58  ;;  %v369_v1 = vmul.f32 %v367_v59, %v344_v39 }
  0xbd   :  { %v390_v18 = vmul.f32 %v385_v9, %v344_v39  ;;  %v391_v21 = vmul.f32 %v389_v16, %v344_v39 }
  0xbf   :  { %v425_v42 = vpop.permute.xlu0 %424 }
  0xc0   :  { %v432_v43 = vrot.slane %v425_v42, %v431_v40 }
  0xc2   :  { %v434_v44 = vmul.f32 %v432_v43, %v420_v41 }
  0xc4   :  { %v708_v45 = vrot.slane %v434_v44, %v71_v27 }
  0xc6   :  { %v443_v36 = vcombine.high %v708_v45, %v708_v45 }
  0xd4   :  { %v81_v48 = vpop.xlane.xlu1 %80 }
  0xd5   :  { %83 = vst.msk [vmem:[#allocation8] sm:$0x3] %vm82_vm6, %v81_v48 }
 0x114   :  { %v165_v2 = vpop.f32.mrb[0].mxu0  ;;  %v241_v3 = vpop.f32.mrb[0].mxu1 }
 0x115   :  { %v348_v5 = vsub.f32 %v346_v61, %v165_v2  ;;  %v370_v6 = vsub.f32 %v368_v62, %v241_v3  ;;  %v167_v7 = vpop.f32.mrb[1].mxu0  ;;  %v243_v8 = vpop.f32.mrb[1].mxu1 }
 0x116   :  { %v349_v10 = vsub.f32 %v347_v0, %v167_v7  ;;  %v371_v11 = vsub.f32 %v369_v1, %v243_v8 }
 0x117   :  { %v394_v12 = vmul.f32 %v348_v5, %v348_v5  ;;  %v396_v13 = vmul.f32 %v370_v6, %v370_v6 }
 0x118   :  { %v395_v14 = vmul.f32 %v349_v10, %v349_v10  ;;  %v397_v15 = vmul.f32 %v371_v11, %v371_v11 }
 0x119   :  { %v398_v17 = vadd.f32 %v396_v13, %v394_v12 }
 0x11a   :  { %v399_v19 = vadd.f32 %v397_v15, %v395_v14 }
 0x11c   :  { %v317_v20 = vpop.f32.mrb[2].mxu0 }
 0x11d   :  { %v392_v22 = vsub.f32 %v390_v18, %v317_v20  ;;  %v319_v23 = vpop.f32.mrb[3].mxu0 }
 0x11e   :  { %v393_v24 = vsub.f32 %v391_v21, %v319_v23 }
 0x11f   :  { %v400_v25 = vmul.f32 %v392_v22, %v392_v22 }
 0x120   :  { %v401_v26 = vmul.f32 %v393_v24, %v393_v24 }
 0x121   :  { %v402_v27 = vadd.f32 %v400_v25, %v398_v17 }
 0x122   :  { %v403_v28 = vadd.f32 %v401_v26, %v399_v19 }
 0x123   :  { %515 = vrsqrt.f32 %v402_v27  ;;  %vm406_vm2 = vcmp.eq.f32.partialorder %v402_v27, inf  ;;  %v409_v32 = vand.u32 2147483648, %v402_v27  ;;  %vm408_vm3 = vcmp.eq.f32.partialorder %v402_v27, 0.0 }
 0x124   :  { %517 = vrsqrt.f32 %v403_v28  ;;  %vm413_vm4 = vcmp.eq.f32.partialorder %v403_v28, inf  ;;  %v416_v35 = vand.u32 2147483648, %v403_v28  ;;  %vm415_vm5 = vcmp.eq.f32.partialorder %v403_v28, 0.0 }
 0x12d   :  { %v516_v29 = vpop.eup %515 }
 0x12e   :  { %v518_v30 = vpop.eup %517  ;;  %v405_v31 = vmul.f32 %v516_v29, %v402_v27 }
 0x12f   :  { %v412_v33 = vmul.f32 %v518_v30, %v403_v28 }
 0x130   :  { %v407_v34 = vsel %vm406_vm2, %v402_v27, %v405_v31 }
 0x131   :  { %v410_v37 = vsel %vm408_vm3, %v409_v32, %v407_v34  ;;  %v414_v38 = vsel %vm413_vm4, %v403_v28, %v412_v33 }
 0x132   :  { %v417_v39 = vsel %vm415_vm5, %v416_v35, %v414_v38  ;;  %v446_v40 = vsub.f32 %v410_v37, %v708_v45 }
 0x133   :  { %v447_v41 = vsub.f32 %v417_v39, %v443_v36 }
 0x134   :  { %v448_v42 = vmul.f32 %v446_v40, %v446_v40 }
 0x135   :  { %v449_v43 = vmul.f32 %v447_v41, %v447_v41 }
 0x136   :  { %v450_v44 = vsel %vm76_vm1, %v448_v42, 0.0 }
 0x137   :  { %v451_v46 = vsel %vm76_vm1, %v449_v43, 0.0 }
 0x138   :  { %v452_v47 = vadd.f32 %v451_v46, %v450_v44 }
 0x13a   :  { %453 = vadd.xlane.f32.xlu1 %v452_v47 }
 0x1c7   :  { %v454_v49 = vpop.xlane.xlu1 %453 }
 0x1c8   :  { %456 = vst.msk [vmem:[#allocation8] sm:$0x3] %vm455_vm7, %v454_v49 }
 0x1c9   :  { %596 = shalt.err (!%p593_p0)
}
 0x1ca   :  { %s597_s19 = scalar_lea.hbm %s736_s6, 32 }
 0x1cb   :  { %p598_p1 = scmp.ne.s32.totalorder %s736_s6, %s597_s19  ;;  %p601_p2 = scmp.lt.u32.totalorder %s597_s19, %s736_s6 }
 0x1cd   :  { %p603_p3 = pnand %p601_p2, %p598_p1 }
 0x1cf   :  { %606 = shalt.err (!%p603_p3)
}
 0x1d0   :  { %466 = dma.vmem_to_hbm [thread:$0]  %s464_s16, 32, %s736_s6, [#allocation4]  }
 0x1d1   :  { %611 = dma.done.wait [#allocation4], 32  }
 0x1d2   :  { %612 = vsyncadd [#allocation4], 4294967264 }
 0x1d3   :  { %470 = vsyncpa [#allocation3], 1 }
 0x1d4   :  { %471 = vsyncpa [#allocation6], 1 }
 0x1d5   :  { %472 = vsyncpa [#allocation4], 1 }

</bundles_post_ra>
